<compile_context>
chip_gen: v6e
topology: v6e:2x2x1
jax: 0.10.0
libtpu: 0.0.40
codegen_flags: <defaults>
</compile_context>

<pallas_src>
import jax
import jax.numpy as jnp
from jax.experimental import pallas as pl
from jax.experimental.pallas import tpu as pltpu

LANES = 128
SUBLANES = 8


def _layout(input_dim, max_tile_rows=1024):
    """Dense (rows, 128) slab layout with balanced tiles.

    Returns (rows, tile_rows, num_steps) with rows = num_steps * tile_rows,
    tile_rows a multiple of 8, and minimal zero-padding waste.
    """
    rows = -(-input_dim // LANES)                       # ceil(D / 128)
    rows = -(-rows // SUBLANES) * SUBLANES              # multiple of 8
    num_steps = max(1, -(-rows // max_tile_rows))
    tile_rows = -(-rows // num_steps)
    tile_rows = -(-tile_rows // SUBLANES) * SUBLANES    # multiple of 8
    rows = num_steps * tile_rows
    return rows, tile_rows, num_steps


def prepare_fc1_weight(weight, input_dim, rows):
    """Init-time only: pad fc1 weight (1, D) into the dense (rows, 128) slab."""
    wflat = weight.reshape(-1).astype(jnp.float32)
    assert wflat.shape[0] == input_dim
    pad = rows * LANES - input_dim
    return jnp.concatenate(
        [wflat, jnp.zeros((pad,), jnp.float32)]).reshape(rows, LANES)


def alpha_kernel(x_ref, w_ref, b_ref, alpha_ref, logit_ref, acc_ref):
    k = pl.program_id(0)

    @pl.when(k == 0)
    def _init():
        acc_ref[...] = jnp.zeros_like(acc_ref)

    # Hot path: pure VPU multiply-accumulate on dense (tile_rows, 128) blocks.
    acc_ref[...] += x_ref[...] * w_ref[...]

    @pl.when(k == pl.num_programs(0) - 1)
    def _finalize():
        # Single cross-lane/sublane reduce (XLU) only once, in the epilogue.
        y = jnp.sum(acc_ref[...]) + b_ref[0]
        logit = jnp.full((1, 1), y, dtype=jnp.float32)
        logit_ref[...] = logit
        # Softmax over the single-element logit, kept for semantic fidelity
        # with nn.Softmax on a 1-D tensor (result is exactly 1.0).
        m = jnp.max(logit)
        p = jnp.exp(logit - m)
        alpha_ref[...] = p / jnp.sum(p)


def alpha_network(W, C, w_slab, bias, *, tile_rows, return_logit=False):
    """W, C: arbitrary-shape arrays; w_slab: (rows,128) pre-padded fc1 weight."""
    rows, lanes = w_slab.shape
    assert lanes == LANES and rows % tile_rows == 0
    D = W.size + C.size
    pad = rows * LANES - D
    assert pad >= 0

    # Per-call path: one concatenate builds the flattened + zero-padded input;
    # the reshape of the contiguous 1-D buffer to (rows, 128) is
    # layout-preserving.  Zero padding cannot perturb the dot product because
    # the weight slab is also zero past input_dim.
    x = jnp.concatenate([
        W.reshape(-1).astype(jnp.float32),
        C.reshape(-1).astype(jnp.float32),
        jnp.zeros((pad,), jnp.float32),
    ]).reshape(rows, LANES)

    num_steps = rows // tile_rows
    block_bytes = tile_rows * LANES * 4
    # 2 inputs x 2 pipeline buffers + 1 accumulator + headroom.
    vmem_limit = 5 * block_bytes + (2 << 20)

    alpha, logit = pl.pallas_call(
        alpha_kernel,
        out_shape=(
            jax.ShapeDtypeStruct((1, 1), jnp.float32),   # alpha
            jax.ShapeDtypeStruct((1, 1), jnp.float32),   # pre-softmax logit
        ),
        grid_spec=pltpu.PrefetchScalarGridSpec(
            num_scalar_prefetch=0,
            grid=(num_steps,),
            in_specs=[
                pl.BlockSpec((tile_rows, LANES), lambda k: (k, 0)),   # x slab
                pl.BlockSpec((tile_rows, LANES), lambda k: (k, 0)),   # weight
                pl.BlockSpec(memory_space=pltpu.MemorySpace.SMEM),    # bias
            ],
            out_specs=[
                pl.BlockSpec((1, 1), lambda k: (0, 0)),
                pl.BlockSpec((1, 1), lambda k: (0, 0)),
            ],
            scratch_shapes=[pltpu.VMEM((tile_rows, LANES), jnp.float32)],
        ),
        compiler_params=pltpu.CompilerParams(
            dimension_semantics=("arbitrary",),
            vmem_limit_bytes=int(vmem_limit),
        ),
        cost_estimate=pl.CostEstimate(
            flops=2 * rows * LANES,
            transcendentals=1,
            bytes_accessed=2 * rows * LANES * 4,
        ),
    )(x, w_slab, bias.reshape(1).astype(jnp.float32))

    alpha = alpha.reshape(1)          # matches torch output shape (1,)
    if return_logit:
        return alpha, logit.reshape(1)
    return alpha


if __name__ == "__main__":
    key = jax.random.PRNGKey(0)
    kW, kC, kw, kb = jax.random.split(key, 4)

    # Small shapes: W (4, 8), C (4, 8)  ->  input_dim = 64
    W = jax.random.normal(kW, (4, 8), dtype=jnp.float32)
    C = jax.random.normal(kC, (4, 8), dtype=jnp.float32)
    input_dim = W.size + C.size

    # Deterministic fc1 parameters (nn.Linear(input_dim, 1) shapes).
    fc1_weight = jax.random.normal(kw, (1, input_dim), dtype=jnp.float32) * 0.1
    fc1_bias = jax.random.normal(kb, (1,), dtype=jnp.float32) * 0.1

    # Init-time weight slab preparation (done once, reused every forward call).
    rows, tile_rows, _ = _layout(input_dim)
    w_slab = prepare_fc1_weight(fc1_weight, input_dim, rows)

    alpha, logit = alpha_network(W, C, w_slab, fc1_bias,
                                 tile_rows=tile_rows, return_logit=True)
    jax.block_until_ready(alpha)

    # Reference check in plain JAX (same math).
    x_ref = jnp.concatenate([W.reshape(-1), C.reshape(-1)])
    logit_ref = fc1_weight @ x_ref + fc1_bias
    alpha_ref = jax.nn.softmax(logit_ref, axis=0)
    assert alpha.shape == (1,)
    assert jnp.allclose(logit, logit_ref, atol=1e-5), (logit, logit_ref)
    assert jnp.allclose(alpha, alpha_ref, atol=1e-6), (alpha, alpha_ref)

    # Second check exercising the multi-step reduction grid (accumulator path).
    W2 = jax.random.normal(kW, (16, 96), dtype=jnp.float32)
    C2 = jax.random.normal(kC, (8, 64), dtype=jnp.float32)
    d2 = W2.size + C2.size
    fw2 = jax.random.normal(kw, (1, d2), dtype=jnp.float32) * 0.05
    fb2 = jax.random.normal(kb, (1,), dtype=jnp.float32) * 0.05
    rows2, tr2, ns2 = _layout(d2, max_tile_rows=8)      # force a multi-block grid
    assert ns2 > 1
    w_slab2 = prepare_fc1_weight(fw2, d2, rows2)
    alpha2, logit2 = alpha_network(W2, C2, w_slab2, fb2,
                                   tile_rows=tr2, return_logit=True)
    jax.block_until_ready(alpha2)
    logit2_ref = fw2 @ jnp.concatenate([W2.reshape(-1), C2.reshape(-1)]) + fb2
    ref2 = jax.nn.softmax(logit2_ref, axis=0)
    assert jnp.allclose(logit2, logit2_ref, atol=1e-4), (logit2, logit2_ref)
    assert jnp.allclose(alpha2, ref2, atol=1e-6), (alpha2, ref2)

    print("KERNEL_OK")
</pallas_src>

<mosaic_0001>
module attributes {stable_mosaic.version = 11 : i64} {
  func.func @alpha_kernel(%arg0: i32, %arg1: memref<8x128xf32, #tpu.memory_space<vmem>>, %arg2: memref<8x128xf32, #tpu.memory_space<vmem>>, %arg3: memref<1xf32, #tpu.memory_space<smem>>, %arg4: memref<1x1xf32, #tpu.memory_space<vmem>>, %arg5: memref<1x1xf32, #tpu.memory_space<vmem>>, %arg6: memref<8x128xf32, #tpu.memory_space<vmem>>) attributes {dimension_semantics = [#tpu.dimension_semantics<arbitrary>], iteration_bounds = array<i64: 1>, scalar_prefetch = 0 : i64, scratch_operands = 1 : i64, tpu.core_type = #tpu.core_type<tc>, window_params = [{transform_indices = @transform_0, window_bounds = array<i64: 8, 128>}, {transform_indices = @transform_1, window_bounds = array<i64: 8, 128>}, {transform_indices = @transform_2, window_bounds = array<i64: 1>}, {pipeline_mode = #tpu.pipeline_mode<synchronous>, transform_indices = @transform_3, window_bounds = array<i64: 1, 1>}, {pipeline_mode = #tpu.pipeline_mode<synchronous>, transform_indices = @transform_4, window_bounds = array<i64: 1, 1>}]} {
    %c0_i32 = arith.constant 0 : i32
    %0 = arith.cmpi eq, %arg0, %c0_i32 : i32
    %1 = arith.extui %0 : i1 to i32
    %c0_i32_0 = arith.constant 0 : i32
    %2 = arith.cmpi ne, %1, %c0_i32_0 : i32
    scf.if %2 {
      %cst = arith.constant 0.000000e+00 : f32
      %12 = vector.broadcast %cst : f32 to vector<8x128xf32>
      %c0_10 = arith.constant 0 : index
      %c0_11 = arith.constant 0 : index
      %13 = vector.load %arg6[%c0_10, %c0_11] : memref<8x128xf32, #tpu.memory_space<vmem>>, vector<8x128xf32>
      tpu.vector_store %arg6[%c0_10, %c0_11], %12 {strides = array<i32>} : memref<8x128xf32, #tpu.memory_space<vmem>>, vector<8x128xf32>,
    } else {
    }
    %c0 = arith.constant 0 : index
    %c0_1 = arith.constant 0 : index
    %3 = vector.load %arg6[%c0, %c0_1] : memref<8x128xf32, #tpu.memory_space<vmem>>, vector<8x128xf32>
    %c0_2 = arith.constant 0 : index
    %c0_3 = arith.constant 0 : index
    %4 = vector.load %arg1[%c0_2, %c0_3] : memref<8x128xf32, #tpu.memory_space<vmem>>, vector<8x128xf32>
    %c0_4 = arith.constant 0 : index
    %c0_5 = arith.constant 0 : index
    %5 = vector.load %arg2[%c0_4, %c0_5] : memref<8x128xf32, #tpu.memory_space<vmem>>, vector<8x128xf32>
    %6 = arith.mulf %4, %5 : vector<8x128xf32>
    %7 = arith.addf %3, %6 : vector<8x128xf32>
    %c0_6 = arith.constant 0 : index
    %c0_7 = arith.constant 0 : index
    %8 = vector.load %arg6[%c0_6, %c0_7] : memref<8x128xf32, #tpu.memory_space<vmem>>, vector<8x128xf32>
    tpu.vector_store %arg6[%c0_6, %c0_7], %7 {strides = array<i32>} : memref<8x128xf32, #tpu.memory_space<vmem>>, vector<8x128xf32>,
    %c0_i32_8 = arith.constant 0 : i32
    %9 = arith.cmpi eq, %arg0, %c0_i32_8 : i32
    %10 = arith.extui %9 : i1 to i32
    %c0_i32_9 = arith.constant 0 : i32
    %11 = arith.cmpi ne, %10, %c0_i32_9 : i32
    scf.if %11 {
      %c0_10 = arith.constant 0 : index
      %c0_11 = arith.constant 0 : index
      %12 = vector.load %arg6[%c0_10, %c0_11] : memref<8x128xf32, #tpu.memory_space<vmem>>, vector<8x128xf32>
      %13 = vector.shape_cast %12 : vector<8x128xf32> to vector<1x8x128xf32>
      %cst = arith.constant dense<0.000000e+00> : vector<1xf32>
      %14 = vector.multi_reduction <add>, %13, %cst [1, 2] : vector<1x8x128xf32> to vector<1xf32>
      %15 = vector.shape_cast %14 : vector<1xf32> to vector<1x1x1xf32>
      %16 = vector.extract %15[0, 0, 0] : f32 from vector<1x1x1xf32>
      %c0_12 = arith.constant 0 : index
      %17 = memref.load %arg3[%c0_12] : memref<1xf32, #tpu.memory_space<smem>>
      %18 = arith.addf %16, %17 : f32
      %19 = vector.broadcast %18 : f32 to vector<1x1xf32>
      %c0_13 = arith.constant 0 : index
      %c0_14 = arith.constant 0 : index
      %20 = vector.load %arg5[%c0_13, %c0_14] : memref<1x1xf32, #tpu.memory_space<vmem>>, vector<1x1xf32>
      tpu.vector_store %arg5[%c0_13, %c0_14], %19 {strides = array<i32>} : memref<1x1xf32, #tpu.memory_space<vmem>>, vector<1x1xf32>,
      %21 = vector.shape_cast %19 : vector<1x1xf32> to vector<1x1x1xf32>
      %cst_15 = arith.constant dense<0xFF800000> : vector<1xf32>
      %22 = vector.multi_reduction <maximumf>, %21, %cst_15 [1, 2] : vector<1x1x1xf32> to vector<1xf32>
      %23 = vector.shape_cast %22 : vector<1xf32> to vector<1x1x1xf32>
      %24 = vector.extract %23[0, 0, 0] : f32 from vector<1x1x1xf32>
      %25 = vector.broadcast %24 : f32 to vector<1x1xf32>
      %26 = arith.subf %19, %25 : vector<1x1xf32>
      %27 = math.exp %26 : vector<1x1xf32>
      %28 = vector.shape_cast %27 : vector<1x1xf32> to vector<1x1x1xf32>
      %cst_16 = arith.constant dense<0.000000e+00> : vector<1xf32>
      %29 = vector.multi_reduction <add>, %28, %cst_16 [1, 2] : vector<1x1x1xf32> to vector<1xf32>
      %30 = vector.shape_cast %29 : vector<1xf32> to vector<1x1x1xf32>
      %31 = vector.extract %30[0, 0, 0] : f32 from vector<1x1x1xf32>
      %32 = vector.broadcast %31 : f32 to vector<1x1xf32>
      %33 = arith.divf %27, %32 : vector<1x1xf32>
      %c0_17 = arith.constant 0 : index
      %c0_18 = arith.constant 0 : index
      %34 = vector.load %arg4[%c0_17, %c0_18] : memref<1x1xf32, #tpu.memory_space<vmem>>, vector<1x1xf32>
      tpu.vector_store %arg4[%c0_17, %c0_18], %33 {strides = array<i32>} : memref<1x1xf32, #tpu.memory_space<vmem>>, vector<1x1xf32>,
    } else {
    }
    return
  }
  func.func @transform_0(%arg0: i32) -> (i32, i32) {
    %c0_i32 = arith.constant 0 : i32
    %c0_i32_0 = arith.constant 0 : i32
    return %arg0, %c0_i32 : i32, i32
  }
  func.func @transform_1(%arg0: i32) -> (i32, i32) {
    %c0_i32 = arith.constant 0 : i32
    %c0_i32_0 = arith.constant 0 : i32
    return %arg0, %c0_i32 : i32, i32
  }
  func.func @transform_2(%arg0: i32) -> i32 {
    %c0_i32 = arith.constant 0 : i32
    %c0_i32_0 = arith.constant 0 : i32
    return %c0_i32 : i32
  }
  func.func @transform_3(%arg0: i32) -> (i32, i32) {
    %c0_i32 = arith.constant 0 : i32
    %c0_i32_0 = arith.constant 0 : i32
    %c0_i32_1 = arith.constant 0 : i32
    return %c0_i32, %c0_i32_0 : i32, i32
  }
  func.func @transform_4(%arg0: i32) -> (i32, i32) {
    %c0_i32 = arith.constant 0 : i32
    %c0_i32_0 = arith.constant 0 : i32
    %c0_i32_1 = arith.constant 0 : i32
    return %c0_i32, %c0_i32_0 : i32, i32
  }
}

</mosaic_0001>

<bundles_post_ra>
// kernel: tpu_custom_call.1
= control target key start
LH: loop header
LB: loop body
LE: loop exit
PB: predicated region body
PF: predicated region fallthrough
CT: control target
= control target key end

     0   :  { %11 = vsyncpa [#allocation5], 0  ;;  %s257_s0 = inlined_call_operand.hbm [shape: f32[8,128], index: 0, kind: input, shape index: {}]   ;;  %s258_s1 = inlined_call_operand.hbm [shape: f32[8,128], index: 1, kind: input, shape index: {}]   ;;  %s259_s2 = inlined_call_operand.<no memory space> [shape: f32[1], index: 2, kind: input, shape index: {}]   ;;  %s260_s3 = inlined_call_operand.hbm [shape: f32[1,1], index: 3, kind: output, shape index: {0}]   ;;  %s261_s4 = inlined_call_operand.hbm [shape: f32[1,1], index: 4, kind: output, shape index: {1}]  }
   0x1   :  { %12 = vsyncpa [#allocation8], 0 }
   0x2   :  { %13 = vsyncpa [#allocation6], 0 }
   0x3   :  { %14 = vsyncpa [#allocation11], 0  ;;  %s211_s15 = smov [#allocation4]   ;;  %s212_s17 = smov [#allocation7]  }
   0x4   :  { %s21_s16 = sshll.u32 %s211_s15, 4  ;;  %s31_s18 = sshll.u32 %s212_s17, 4  ;;  %s22_s16 = int_to_ptr.vmem [resolvable:$true] %s21_s16  ;;  %s32_s18 = int_to_ptr.vmem [resolvable:$true] %s31_s18 }
   0x5   :  { %s131_s19 = scalar_lea.vmem %s22_s16, 128  ;;  %p136_p1 = scmp.lt.s32.totalorder %s22_s16, %s22_s16 }
   0x6   :  { %p132_p0 = scmp.ne.s32.totalorder %s22_s16, %s131_s19  ;;  %p137_p2 = scmp.lt.s32.totalorder %s131_s19, %s131_s19 }
   0x8   :  { %p138_p3 = por %p137_p2, %p136_p1 }
   0xa   :  { %p139_p4 = pnand %p138_p3, %p132_p0 }
   0xc   :  { %142 = shalt.err (!%p139_p4)
}
   0xd   :  { %24 = dma.hbm_to_vmem [thread:$0]  %s257_s0, 128, %s22_s16, [#allocation5]  }
   0xe   :  { %s151_s22 = scalar_lea.vmem %s32_s18, 128  ;;  %p156_p6 = scmp.lt.s32.totalorder %s32_s18, %s32_s18 }
   0xf   :  { %p152_p5 = scmp.ne.s32.totalorder %s32_s18, %s151_s22  ;;  %p157_p7 = scmp.lt.s32.totalorder %s151_s22, %s151_s22 }
  0x11   :  { %p158_p8 = por %p157_p7, %p156_p6 }
  0x13   :  { %p159_p9 = pnand %p158_p8, %p152_p5 }
  0x15   :  { %162 = shalt.err (!%p159_p9)
}
  0x16   :  { %34 = dma.hbm_to_vmem [thread:$0]  %s258_s1, 128, %s32_s18, [#allocation8]  }
  0x17   :  { %203 = dma.done.wait [#allocation5], 128  }
  0x18   :  { %204 = vsyncadd [#allocation5], 4294967168 }
  0x19   :  { %205 = dma.done.wait [#allocation8], 128  }
  0x1a   :  { %206 = vsyncadd [#allocation8], 4294967168  ;;  %v49_v0 = vld [vmem:[#allocation4] sm:$0xff]  ;;  %v50_v1 = vld [vmem:[#allocation7] sm:$0xff]  ;;  %s213_s0 = smov [#allocation10]   ;;  %vm70_vm0 = vcmask 0  }
  0x1b   :  { %v51_v2 = vmul.f32 %v50_v1, %v49_v0  ;;  %s97_s25 = sshll.u32 %s213_s0, 4  ;;  %s98_s25 = int_to_ptr.vmem [resolvable:$true] %s97_s25 }
  0x1c   :  { %s163_s29 = scalar_lea.vmem %s98_s25, 16  ;;  %s167_s30 = scalar_lea.vmem %s98_s25, 32 }
  0x1d   :  { %58 = vadd.xlane.f32.xlu0 %v51_v2  ;;  %p164_p10 = scmp.ne.s32.totalorder %s98_s25, %s163_s29  ;;  %p168_p11 = scmp.lt.s32.totalorder %s98_s25, %s98_s25 }
  0x1e   :  { %p169_p12 = scmp.lt.s32.totalorder %s167_s30, %s163_s29 }
  0x20   :  { %p170_p13 = por %p169_p12, %p168_p11 }
  0x22   :  { %p171_p0 = pnand %p170_p13, %p164_p10 }
  0xa6   :  { %v59_v3 = vpop.xlane.xlu0 %58 }
  0xa7   :  { %v60_v4 = vrot.slane %v59_v3, 4 }
  0xa9   :  { %v61_v5 = vadd.f32 %v60_v4, %v59_v3 }
  0xab   :  { %v62_v6 = vrot.slane %v61_v5, 2 }
  0xad   :  { %v63_v7 = vadd.f32 %v62_v6, %v61_v5 }
  0xaf   :  { %v64_v8 = vrot.slane %v63_v7, 1 }
  0xb1   :  { %v65_v9 = vadd.f32 %v64_v8, %v63_v7 }
  0xb3   :  { %111 = vpush %v65_v9 }
  0xe4   :  { %s112_s26 = spop %111 }
  0xe5   :  { %s68_s28 = sadd.f32 %s112_s26, %s259_s2 }
  0xe7   :  { %v69_v10 = vstv %s68_s28 }
  0xe8   :  { %v72_v11 = vsub.f32 %v69_v10, %v69_v10  ;;  %71 = vst.msk [vmem:[#allocation10] sm:$0x1] %vm70_vm0, %v69_v10 }
  0xe9   :  { %174 = shalt.err (!%p171_p0)
}
  0xea   :  { %100 = dma.vmem_to_hbm [thread:$0]  %s98_s25, 16, %s261_s4, [#allocation11]   ;;  %v73_v12 = vmul.f32 1.442695, %v72_v11 }
  0xeb   :  { %s214_s7 = smov [#allocation9]  }
  0xec   :  { %119 = vpow2.f32 %v73_v12  ;;  %s87_s8 = sshll.u32 %s214_s7, 4  ;;  %s88_s8 = int_to_ptr.vmem [resolvable:$true] %s87_s8 }
  0xed   :  { %s183_s9 = scalar_lea.vmem %s88_s8, 16  ;;  %s187_s10 = scalar_lea.vmem %s88_s8, 32 }
  0xee   :  { %p184_p1 = scmp.ne.s32.totalorder %s88_s8, %s183_s9  ;;  %p188_p2 = scmp.lt.s32.totalorder %s88_s8, %s88_s8 }
  0xef   :  { %p189_p3 = scmp.lt.s32.totalorder %s187_s10, %s183_s9 }
  0xf1   :  { %p190_p4 = por %p189_p3, %p188_p2 }
  0xf3   :  { %p191_p5 = pnand %p190_p4, %p184_p1 }
  0xf9   :  { %v120_v13 = vpop.eup %119 }
  0xfa   :  { %113 = vpush %v120_v13 }
 0x12b   :  { %s114_s2 = spop %113 }
 0x12c   :  { %v77_v14 = vstv %s114_s2 }
 0x12d   :  { %121 = vrcp.f32 %v77_v14 }
 0x13a   :  { %v122_v15 = vpop.eup %121 }
 0x13b   :  { %v79_v16 = vmul.f32 %v122_v15, %v120_v13 }
 0x13d   :  { %80 = vst.msk [vmem:[#allocation9] sm:$0x1] %vm70_vm0, %v79_v16 }
 0x13e   :  { %194 = shalt.err (!%p191_p5)
}
 0x13f   :  { %90 = dma.vmem_to_hbm [thread:$0]  %s88_s8, 16, %s260_s3, [#allocation6]  }
 0x140   :  { %207 = dma.done.wait [#allocation6], 16  }
 0x141   :  { %208 = vsyncadd [#allocation6], 4294967280 }
 0x142   :  { %209 = dma.done.wait [#allocation11], 16  }
 0x143   :  { %210 = vsyncadd [#allocation11], 4294967280 }
 0x144   :  { %107 = vsyncpa [#allocation5], 1 }
 0x145   :  { %108 = vsyncpa [#allocation8], 1 }
 0x146   :  { %109 = vsyncpa [#allocation6], 1 }
 0x147   :  { %110 = vsyncpa [#allocation11], 1 }

</bundles_post_ra>
